<compile_context>
chip_gen: v7x
topology: tpu7x:2x2x1
jax: 0.10.0
libtpu: 0.0.40
codegen_flags: <defaults>
</compile_context>

<pallas_src>
import functools

import jax
import jax.numpy as jnp
from jax import lax
from jax.experimental import pallas as pl
from jax.experimental.pallas import tpu as pltpu


def _round_up(x, m):
    return ((x + m - 1) // m) * m


def _view_saliency_kernel(x_ref, r_ref, *, n_valid):
    # x_ref: (Bt, D, Np)   r_ref: (Bt, Np)
    x = x_ref[...]                                    # native dtype -> MXU directly

    # Gram matrix G[b, i, j] = sum_d x[b, d, i] * x[b, d, j]  (MXU, f32 accumulate)
    g = lax.dot_general(
        x, x,
        dimension_numbers=(((1,), (1,)), ((0,), (0,))),
        preferred_element_type=jnp.float32,
    )                                                 # (Bt, Np, Np) f32

    n_pad = g.shape[-1]
    row = lax.broadcasted_iota(jnp.int32, (n_pad, n_pad), 0)
    col = lax.broadcasted_iota(jnp.int32, (n_pad, n_pad), 1)
    diag = row == col                                 # (Np, Np) bool

    # Squared norms straight off the Gram diagonal (f32-accumulated on the MXU).
    sq = jnp.sum(jnp.where(diag[None], g, 0.0), axis=2)        # (Bt, Np)

    # ||x_i - x_j||^2 = sq_i + sq_j - 2 G_ij; clamp (cancellation can go slightly < 0).
    dsq = sq[:, :, None] + sq[:, None, :] - 2.0 * g
    dsq = jnp.maximum(dsq, 0.0)

    keep = jnp.logical_not(diag)
    if n_valid != n_pad:
        # Mask padded views out of both rows and columns so they never enter the sums.
        keep = keep & (row < n_valid) & (col < n_valid)

    dist = jnp.where(keep[None], jnp.sqrt(dsq), 0.0)            # (Bt, Np, Np)

    s = jnp.sum(dist, axis=2)                                   # (Bt, Np)
    total = jnp.sum(s, axis=1, keepdims=True) + 1e-10           # (Bt, 1)

    # EUP approximate reciprocal + one Newton step (restores ~f32 accuracy).
    inv0 = pl.reciprocal(total, approx=True)
    inv = inv0 * (2.0 - total * inv0)

    r_ref[...] = (s * inv).astype(r_ref.dtype)


def view_saliency(x):
    """Pallas TPU implementation of ViewSaliencyLayer.forward.  x: (B, D, N) -> (B, N)."""
    B, D, N = x.shape
    itemsize = jnp.dtype(x.dtype).itemsize

    # Batch tile: sublane-aligned for the dtype (8 rows f32, 16 bf16, 32 int8).
    block_b = {4: 8, 2: 16, 1: 32}.get(itemsize, 8)

    # Lane-pad the view axis only when it is large and misaligned to 128 lanes.
    n_pad = _round_up(N, 128) if (N > 128 and N % 128 != 0) else N
    b_pad = _round_up(B, block_b)

    xp = x
    if (b_pad, n_pad) != (B, N):
        xp = jnp.zeros((b_pad, D, n_pad), x.dtype).at[:B, :, :N].set(x)

    # VMEM budget: double-buffered input/output blocks + f32 (Bt, Np, Np) temporaries.
    est = (2 * block_b * D * n_pad * itemsize
           + 2 * block_b * n_pad * itemsize
           + 5 * block_b * n_pad * n_pad * 4)
    vmem_limit = max(32 * 1024 * 1024, int(1.5 * est))

    kernel = functools.partial(_view_saliency_kernel, n_valid=N)

    out = pl.pallas_call(
        kernel,
        out_shape=jax.ShapeDtypeStruct((b_pad, n_pad), x.dtype),
        grid_spec=pltpu.PrefetchScalarGridSpec(
            num_scalar_prefetch=0,
            grid=(b_pad // block_b,),
            in_specs=[pl.BlockSpec((block_b, D, n_pad), lambda b: (b, 0, 0))],
            out_specs=pl.BlockSpec((block_b, n_pad), lambda b: (b, 0)),
        ),
        compiler_params=pltpu.CompilerParams(
            dimension_semantics=("parallel",),
            vmem_limit_bytes=vmem_limit,
        ),
    )(xp)

    return out[:B, :N]


def _view_saliency_ref(x):
    """Pure-JAX reference mirroring the PyTorch forward exactly."""
    diffs = x[:, :, None, :] - x[:, :, :, None]           # (B, D, N, N)
    dist = jnp.sqrt(jnp.sum(diffs * diffs, axis=1))       # (B, N, N)
    n = x.shape[-1]
    eye = jnp.eye(n, dtype=bool)[None]
    dist = jnp.where(eye, 0.0, dist)
    s = dist.sum(axis=2)                                  # (B, N)
    sums = s.sum(axis=1, keepdims=True)                   # (B, 1)
    return s / (sums + 1e-10)


if __name__ == "__main__":
    key = jax.random.PRNGKey(0)
    k1, k2 = jax.random.split(key)

    # Shapes implied by PanoramaCNNEx: per-axis CNN features of dim 100 stacked
    # over N = 3 views -> view-saliency input (B, 100, 3).
    B, D, N = 2, 100, 3
    x = jax.random.normal(k1, (B, D, N), dtype=jnp.float32)

    r_kernel = jax.block_until_ready(view_saliency(x))
    r_ref = jax.block_until_ready(_view_saliency_ref(x))
    assert r_kernel.shape == (B, N)
    assert jnp.allclose(r_kernel, r_ref, atol=1e-5, rtol=1e-5)

    # Also exercise the batch-padding and lane-padding/masking path (N > 128, misaligned).
    x2 = jax.random.normal(k2, (3, 16, 130), dtype=jnp.float32)
    r2_kernel = jax.block_until_ready(view_saliency(x2))
    r2_ref = jax.block_until_ready(_view_saliency_ref(x2))
    assert r2_kernel.shape == (3, 130)
    assert jnp.allclose(r2_kernel, r2_ref, atol=1e-5, rtol=1e-5)

    print("KERNEL_OK")
</pallas_src>

<mosaic_0001>
module attributes {stable_mosaic.version = 11 : i64} {
  func.func @_view_saliency_kernel(%arg0: i32, %arg1: memref<8x100x3xf32, #tpu.memory_space<vmem>>, %arg2: memref<8x3xf32, #tpu.memory_space<vmem>>) attributes {dimension_semantics = [#tpu.dimension_semantics<parallel>], iteration_bounds = array<i64: 1>, scalar_prefetch = 0 : i64, scratch_operands = 0 : i64, tpu.core_type = #tpu.core_type<tc>, window_params = [{transform_indices = @transform_0, window_bounds = array<i64: 8, 100, 3>}, {transform_indices = @transform_1, window_bounds = array<i64: 8, 3>}]} {
    %c0 = arith.constant 0 : index
    %c0_0 = arith.constant 0 : index
    %c0_1 = arith.constant 0 : index
    %0 = vector.load %arg1[%c0, %c0_0, %c0_1] : memref<8x100x3xf32, #tpu.memory_space<vmem>>, vector<8x100x3xf32>
    %cst = arith.constant dense<0.000000e+00> : vector<8x3x3xf32>
    %1 = tpu.matmul %0, %0, %cst {dimension_numbers = #tpu.dot_dimension_numbers<[1], [1], [2], [2], [0, 0, 0, 2, 1, 2], [0], [0]>} : vector<8x100x3xf32>, vector<8x100x3xf32>, vector<8x3x3xf32> -> vector<8x3x3xf32>
    %2 = tpu.iota {dimensions = array<i32: 0>} : vector<3x3xi32>
    %3 = tpu.iota {dimensions = array<i32: 1>} : vector<3x3xi32>
    %4 = arith.cmpi eq, %2, %3 : vector<3x3xi32>
    %5 = vector.shape_cast %4 : vector<3x3xi1> to vector<1x3x3xi1>
    %cst_2 = arith.constant 0.000000e+00 : f32
    %6 = vector.shape_cast %5 : vector<1x3x3xi1> to vector<1x3x3xi1>
    %7 = vector.broadcast %6 : vector<1x3x3xi1> to vector<8x3x3xi1>
    %8 = vector.broadcast %cst_2 : f32 to vector<8x3x3xf32>
    %9 = arith.select %7, %1, %8 : vector<8x3x3xi1>, vector<8x3x3xf32>
    %cst_3 = arith.constant dense<0.000000e+00> : vector<8x3xf32>
    %10 = vector.multi_reduction <add>, %9, %cst_3 [2] : vector<8x3x3xf32> to vector<8x3xf32>
    %11 = vector.shape_cast %10 : vector<8x3xf32> to vector<8x3x1xf32>
    %12 = vector.shape_cast %10 : vector<8x3xf32> to vector<8x1x3xf32>
    %13 = vector.broadcast %11 : vector<8x3x1xf32> to vector<8x3x3xf32>
    %14 = vector.broadcast %12 : vector<8x1x3xf32> to vector<8x3x3xf32>
    %15 = arith.addf %13, %14 : vector<8x3x3xf32>
    %cst_4 = arith.constant 2.000000e+00 : f32
    %16 = vector.broadcast %cst_4 : f32 to vector<8x3x3xf32>
    %17 = arith.mulf %16, %1 : vector<8x3x3xf32>
    %18 = arith.subf %15, %17 : vector<8x3x3xf32>
    %cst_5 = arith.constant 0.000000e+00 : f32
    %19 = vector.broadcast %cst_5 : f32 to vector<8x3x3xf32>
    %20 = arith.maximumf %18, %19 : vector<8x3x3xf32>
    %cst_6 = arith.constant dense<true> : vector<3x3xi1>
    %21 = arith.xori %4, %cst_6 : vector<3x3xi1>
    %22 = vector.shape_cast %21 : vector<3x3xi1> to vector<1x3x3xi1>
    %23 = math.sqrt %20 : vector<8x3x3xf32>
    %cst_7 = arith.constant 0.000000e+00 : f32
    %24 = vector.shape_cast %22 : vector<1x3x3xi1> to vector<1x3x3xi1>
    %25 = vector.broadcast %24 : vector<1x3x3xi1> to vector<8x3x3xi1>
    %26 = vector.broadcast %cst_7 : f32 to vector<8x3x3xf32>
    %27 = arith.select %25, %23, %26 : vector<8x3x3xi1>, vector<8x3x3xf32>
    %cst_8 = arith.constant dense<0.000000e+00> : vector<8x3xf32>
    %28 = vector.multi_reduction <add>, %27, %cst_8 [2] : vector<8x3x3xf32> to vector<8x3xf32>
    %cst_9 = arith.constant dense<0.000000e+00> : vector<8xf32>
    %29 = vector.multi_reduction <add>, %28, %cst_9 [1] : vector<8x3xf32> to vector<8xf32>
    %30 = vector.shape_cast %29 : vector<8xf32> to vector<8x1xf32>
    %cst_10 = arith.constant 1.000000e-10 : f32
    %31 = vector.broadcast %cst_10 : f32 to vector<8x1xf32>
    %32 = arith.addf %30, %31 : vector<8x1xf32>
    %33 = tpu.reciprocal %32 {approx = true} : vector<8x1xf32> -> vector<8x1xf32>
    %34 = arith.mulf %32, %33 : vector<8x1xf32>
    %cst_11 = arith.constant 2.000000e+00 : f32
    %35 = vector.broadcast %cst_11 : f32 to vector<8x1xf32>
    %36 = arith.subf %35, %34 : vector<8x1xf32>
    %37 = arith.mulf %33, %36 : vector<8x1xf32>
    %38 = vector.broadcast %37 : vector<8x1xf32> to vector<8x3xf32>
    %39 = arith.mulf %28, %38 : vector<8x3xf32>
    %c0_12 = arith.constant 0 : index
    %c0_13 = arith.constant 0 : index
    %40 = vector.load %arg2[%c0_12, %c0_13] : memref<8x3xf32, #tpu.memory_space<vmem>>, vector<8x3xf32>
    tpu.vector_store %arg2[%c0_12, %c0_13], %39 {strides = array<i32>} : memref<8x3xf32, #tpu.memory_space<vmem>>, vector<8x3xf32>,
    return
  }
  func.func @transform_0(%arg0: i32) -> (i32, i32, i32) {
    %c0_i32 = arith.constant 0 : i32
    %c0_i32_0 = arith.constant 0 : i32
    %c0_i32_1 = arith.constant 0 : i32
    return %arg0, %c0_i32, %c0_i32_0 : i32, i32, i32
  }
  func.func @transform_1(%arg0: i32) -> (i32, i32) {
    %c0_i32 = arith.constant 0 : i32
    %c0_i32_0 = arith.constant 0 : i32
    return %arg0, %c0_i32 : i32, i32
  }
}

</mosaic_0001>

<bundles_post_ra>
// kernel: tpu_custom_call.1
= control target key start
LH: loop header
LB: loop body
LE: loop exit
PB: predicated region body
PF: predicated region fallthrough
CT: control target
= control target key end

     0   :  { %v1916_v3 = vmov 0.0|0.0   ;;  %vm1917_vm0 = vmmov 0   ;;  %v1918_v9 = vmov 0.0   ;;  %vm148_vm1 = vcmask 1043456   ;;  %s2788_s0 = inlined_call_operand.vmem [shape: f32[8,100,3], index: 0, kind: input, shape index: {}]   ;;  %s2789_s1 = inlined_call_operand.vmem [shape: f32[8,3], index: 1, kind: output, shape index: {}]  }
   0x1   :  { %v21_v0 = vld [vmem:[%s2788_s0 + $0x68] sm:$0xff]  ;;  %v8_v1 = vld [vmem:[%s2788_s0] sm:$0xff]  ;;  %v22_v2 = vld [vmem:[%s2788_s0 + $0x70] sm:$0xff]  ;;  %1747 = vmatprep.subr.bf16.mxu0 %v1916_v3  ;;  %1765 = vmatprep.subr.bf16.mxu1 %v1916_v3  ;;  %vm144_vm2 = vcmask 818176   ;;  %vm993_vm4 = vcmask 18432   ;;  %vm1919_vm5 = vmmov 1  }
   0x2   :  { %222 = vxpose.xlu1.b32.start [1/13] (short) (narrow) %v21_v0, 8  ;;  %112 = vxpose.xlu0.b32.start [1/13] (short) (narrow) %v8_v1, 8  ;;  %v9_v4 = vld [vmem:[%s2788_s0 + $0x8] sm:$0xff]  ;;  %v1766_v5 = vpack.c.bf16 %v22_v2, %v21_v0  ;;  %v23_v6 = vld [vmem:[%s2788_s0 + $0x78] sm:$0xff]  ;;  %v24_v7 = vld [vmem:[%s2788_s0 + $0x80] sm:$0xff] }
   0x3   :  { %v1748_v8 = vpack.c.bf16 %v9_v4, %v8_v1  ;;  %1541 = vmatprep.mubr.msk.f32.mxu0 %vm1917_vm0, %v1918_v9  ;;  %1570 = vmatprep.mubr.msk.f32.mxu1 %vm1917_vm0, %v1918_v9  ;;  %v10_v10 = vld [vmem:[%s2788_s0 + $0x10] sm:$0xff]  ;;  %v1769_v11 = vpack.c.bf16 %v24_v7, %v23_v6  ;;  %v11_v12 = vld [vmem:[%s2788_s0 + $0x18] sm:$0xff]  ;;  %v25_v14 = vld [vmem:[%s2788_s0 + $0x88] sm:$0xff] }
   0x4   :  { %1767 = vmatpush3.bf16.msra.mxu1 %v1766_v5  ;;  %v1751_v13 = vpack.c.bf16 %v11_v12, %v10_v10  ;;  %v26_v15 = vld [vmem:[%s2788_s0 + $0x90] sm:$0xff]  ;;  %v12_v16 = vld [vmem:[%s2788_s0 + $0x20] sm:$0xff]  ;;  %v13_v18 = vld [vmem:[%s2788_s0 + $0x28] sm:$0xff] }
   0x5   :  { %1749 = vmatpush3.bf16.msra.mxu0 %v1748_v8  ;;  %1768 = vmatprep.subr.bf16.mxu1 %v1916_v3  ;;  %v1772_v17 = vpack.c.bf16 %v26_v15, %v25_v14  ;;  %v1754_v19 = vpack.c.bf16 %v13_v18, %v12_v16  ;;  %v27_v20 = vld [vmem:[%s2788_s0 + $0x98] sm:$0xff]  ;;  %v1981_v21 = vld [vmem:[%s2788_s0 + $0xa0] sm:$0xff]  ;;  %v14_v23 = vld [vmem:[%s2788_s0 + $0x30] sm:$0xff] }
   0x6   :  { %223 = vxpose.xlu1.b32.cont [2/13] (short) (narrow) %v22_v2, 8  ;;  %113 = vxpose.xlu0.b32.cont [2/13] (short) (narrow) %v9_v4, 8  ;;  %v1986_v22 = vld [vmem:[%s2788_s0 + $0x138] sm:$0xff]  ;;  %v1995_v24 = vld [vmem:[%s2788_s0 + $0x140] sm:$0xff]  ;;  %v2000_v25 = vld [vmem:[%s2788_s0 + $0xd0] sm:$0xff]  ;;  %v1775_v32 = vpack.c.bf16 %v1981_v21, %v27_v20 }
   0x7   :  { %1750 = vmatprep.subr.bf16.mxu0 %v1916_v3  ;;  %v2005_v26 = vld [vmem:[%s2788_s0 + $0xd8] sm:$0xff]  ;;  %v1802_v28 = vpack.c.bf16 %v1995_v24, %v1986_v22  ;;  %v2017_v30 = vld [vmem:[%s2788_s0 + $0x148] sm:$0xff]  ;;  %v2022_v31 = vld [vmem:[%s2788_s0 + $0x150] sm:$0xff] }
   0x8   :  { %1770 = vmatpush3.bf16.msra.mxu1 %v1769_v11  ;;  %v15_v27 = vld [vmem:[%s2788_s0 + $0x38] sm:$0xff]  ;;  %v1784_v29 = vpack.c.bf16 %v2005_v26, %v2000_v25  ;;  %v2029_v33 = vld [vmem:[%s2788_s0 + $0xe0] sm:$0xff]  ;;  %v1805_v34 = vpack.c.bf16 %v2022_v31, %v2017_v30  ;;  %v2036_v35 = vld [vmem:[%s2788_s0 + $0xe8] sm:$0xff] }
   0x9   :  { %1752 = vmatpush3.bf16.msra.mxu0 %v1751_v13  ;;  %1771 = vmatprep.subr.bf16.mxu1 %v1916_v3  ;;  %v2041_v36 = vld [vmem:[%s2788_s0 + $0x158] sm:$0xff]  ;;  %v1757_v37 = vpack.c.bf16 %v15_v27, %v14_v23  ;;  %v1787_v38 = vpack.c.bf16 %v2036_v35, %v2029_v33  ;;  %v2048_v39 = vld [vmem:[%s2788_s0 + $0xf0] sm:$0xff]  ;;  %v2053_v40 = vld [vmem:[%s2788_s0 + $0x160] sm:$0xff] }
   0xa   :  { %224 = vxpose.xlu1.b32.cont [3/13] (short) (narrow) %v23_v6, 8  ;;  %114 = vxpose.xlu0.b32.cont [3/13] (short) (narrow) %v10_v10, 8  ;;  %v2058_v41 = vld [vmem:[%s2788_s0 + $0xf8] sm:$0xff]  ;;  %v1808_v42 = vpack.c.bf16 %v2053_v40, %v2041_v36  ;;  %v29_v44 = vld [vmem:[%s2788_s0 + $0xa8] sm:$0xff]  ;;  %v30_v45 = vld [vmem:[%s2788_s0 + $0xb0] sm:$0xff] }
   0xb   :  { %1753 = vmatprep.subr.bf16.mxu0 %v1916_v3  ;;  %v1790_v43 = vpack.c.bf16 %v2058_v41, %v2048_v39  ;;  %v16_v46 = vld [vmem:[%s2788_s0 + $0x40] sm:$0xff]  ;;  %v1778_v47 = vpack.c.bf16 %v30_v45, %v29_v44  ;;  %v17_v48 = vld [vmem:[%s2788_s0 + $0x48] sm:$0xff]  ;;  %v31_v50 = vld [vmem:[%s2788_s0 + $0xb8] sm:$0xff] }
   0xc   :  { %1773 = vmatpush3.bf16.msra.mxu1 %v1772_v17  ;;  %v1760_v49 = vpack.c.bf16 %v17_v48, %v16_v46  ;;  %v32_v51 = vld [vmem:[%s2788_s0 + $0xc0] sm:$0xff]  ;;  %v18_v52 = vld [vmem:[%s2788_s0 + $0x50] sm:$0xff]  ;;  %v19_v54 = vld [vmem:[%s2788_s0 + $0x58] sm:$0xff] }
   0xd   :  { %1755 = vmatpush3.bf16.msra.mxu0 %v1754_v19  ;;  %1774 = vmatprep.subr.bf16.mxu1 %v1916_v3  ;;  %v1781_v53 = vpack.c.bf16 %v32_v51, %v31_v50  ;;  %v1763_v55 = vpack.c.bf16 %v19_v54, %v18_v52  ;;  %v33_v56 = vld [vmem:[%s2788_s0 + $0xc8] sm:$0xf]  ;;  %v20_v57 = vld [vmem:[%s2788_s0 + $0x60] sm:$0xf]  ;;  %v2134_v60 = vld [vmem:[%s2788_s0 + $0x170] sm:$0xff] }
   0xe   :  { %225 = vxpose.xlu1.b32.cont [4/13] (short) (narrow) %v24_v7, 8  ;;  %115 = vxpose.xlu0.b32.cont [4/13] (short) (narrow) %v11_v12, 8  ;;  %v2122_v58 = vld [vmem:[%s2788_s0 + $0x168] sm:$0xff]  ;;  %v2127_v59 = vld [vmem:[%s2788_s0 + $0x100] sm:$0xff]  ;;  %v2146_v62 = vld [vmem:[%s2788_s0 + $0x178] sm:$0xff] }
   0xf   :  { %1756 = vmatprep.subr.bf16.mxu0 %v1916_v3  ;;  %v2139_v61 = vld [vmem:[%s2788_s0 + $0x108] sm:$0xff]  ;;  %v2151_v63 = vld [vmem:[%s2788_s0 + $0x110] sm:$0xff]  ;;  %v2158_v0 = vld [vmem:[%s2788_s0 + $0x180] sm:$0xff] }
  0x10   :  { %1776 = vmatpush3.bf16.msra.mxu1 %v1775_v32  ;;  %v2163_v1 = vld [vmem:[%s2788_s0 + $0x118] sm:$0xff]  ;;  %v2170_v2 = vld [vmem:[%s2788_s0 + $0x188] sm:$0xff]  ;;  %v2175_v4 = vld [vmem:[%s2788_s0 + $0x120] sm:$0xff] }
  0x11   :  { %1758 = vmatpush3.bf16.msra.mxu0 %v1757_v37  ;;  %1777 = vmatprep.subr.bf16.mxu1 %v1916_v3  ;;  %v2182_v5 = vld [vmem:[%s2788_s0 + $0x190] sm:$0xff]  ;;  %v2187_v6 = vld [vmem:[%s2788_s0 + $0x128] sm:$0xff]  ;;  %v2194_v7 = vld [vmem:[%s2788_s0 + $0x198] sm:$0xf] }
  0x12   :  { %226 = vxpose.xlu1.b32.cont [5/13] (short) (narrow) %v25_v14, 8  ;;  %116 = vxpose.xlu0.b32.cont [5/13] (short) (narrow) %v12_v16, 8  ;;  %v2199_v8 = vld [vmem:[%s2788_s0 + $0x130] sm:$0xf]  ;;  %v2206_v10 = vld [vmem:[%s2788_s0 + $0x208] sm:$0xff]  ;;  %v2211_v11 = vld [vmem:[%s2788_s0 + $0x1a0] sm:$0xff] }
  0x13   :  { %1759 = vmatprep.subr.bf16.mxu0 %v1916_v3  ;;  %v2218_v12 = vld [vmem:[%s2788_s0 + $0x210] sm:$0xff]  ;;  %v2223_v13 = vld [vmem:[%s2788_s0 + $0x1a8] sm:$0xff]  ;;  %v2230_v14 = vld [vmem:[%s2788_s0 + $0x218] sm:$0xff] }
  0x14   :  { %1779 = vmatpush3.bf16.msra.mxu1 %v1778_v47  ;;  %v2242_v16 = vld [vmem:[%s2788_s0 + $0x220] sm:$0xff]  ;;  %v2247_v17 = vld [vmem:[%s2788_s0 + $0x1b8] sm:$0xff] }
  0x15   :  { %1761 = vmatpush3.bf16.msra.mxu0 %v1760_v49  ;;  %1780 = vmatprep.subr.bf16.mxu1 %v1916_v3  ;;  %v2259_v19 = vld [vmem:[%s2788_s0 + $0x1c0] sm:$0xff]  ;;  %v2433_v47 = vld [vmem:[%s2788_s0 + $0x278] sm:$0xff] }
  0x16   :  { %227 = vxpose.xlu1.b32.cont [6/13] (short) (narrow) %v26_v15, 8  ;;  %117 = vxpose.xlu0.b32.cont [6/13] (short) (narrow) %v13_v18, 8  ;;  %v2235_v15 = vld [vmem:[%s2788_s0 + $0x1b0] sm:$0xff]  ;;  %v2254_v18 = vld [vmem:[%s2788_s0 + $0x228] sm:$0xff]  ;;  %v2445_v49 = vld [vmem:[%s2788_s0 + $0x280] sm:$0xff] }
  0x17   :  { %1762 = vmatprep.subr.bf16.mxu0 %v1916_v3 }
  0x18   :  { %1782 = vmatpush3.bf16.msra.mxu1 %v1781_v53  ;;  %v2469_v53 = vld [vmem:[%s2788_s0 + $0x290] sm:$0xff] }
  0x19   :  { %1764 = vmatpush3.bf16.msra.mxu0 %v1763_v55  ;;  %1568 = vmatprep.subr.mxu1 %v1918_v9  ;;  %v2481_v55 = vld [vmem:[%s2788_s0 + $0x298] sm:$0xff] }
  0x1a   :  { %228 = vxpose.xlu1.b32.cont [7/13] (short) (narrow) %v27_v20, 8  ;;  %118 = vxpose.xlu0.b32.cont [7/13] (short) (narrow) %v14_v23, 8  ;;  %v2266_v20 = vld [vmem:[%s2788_s0 + $0x230] sm:$0xff]  ;;  %v2278_v23 = vld [vmem:[%s2788_s0 + $0x238] sm:$0xff] }
  0x1b   :  { %1539 = vmatprep.subr.mxu0 %v1918_v9 }
  0x1c   :  { %1569 = vmatpush3.msk.msra.mxu1 %vm148_vm1, %v33_v56 }
  0x1d   :  { %1540 = vmatpush3.msk.msra.mxu0 %vm148_vm1, %v20_v57  ;;  %1801 = vmatprep.subr.bf16.mxu1 %v1916_v3 }
  0x1e   :  { %229 = vxpose.xlu1.b32.cont [8/13] (short) (narrow) %v1981_v21, 8  ;;  %119 = vxpose.xlu0.b32.cont [8/13] (short) (narrow) %v15_v27, 8  ;;  %v2271_v21 = vld [vmem:[%s2788_s0 + $0x1c8] sm:$0xff]  ;;  %v2283_v27 = vld [vmem:[%s2788_s0 + $0x1d0] sm:$0xff] }
  0x1f   :  { %1783 = vmatprep.subr.bf16.mxu0 %v1916_v3 }
  0x22   :  { %230 = vxpose.xlu1.b32.cont [9/13] (short) (narrow) %v29_v44, 8  ;;  %120 = vxpose.xlu0.b32.cont [9/13] (short) (narrow) %v16_v46, 8  ;;  %v2292_v44 = vld [vmem:[%s2788_s0 + $0x240] sm:$0xff]  ;;  %v2312_v46 = vld [vmem:[%s2788_s0 + $0x248] sm:$0xff] }
  0x26   :  { %231 = vxpose.xlu1.b32.cont [10/13] (short) (narrow) %v30_v45, 8  ;;  %121 = vxpose.xlu0.b32.cont [10/13] (short) (narrow) %v17_v48, 8  ;;  %v2297_v45 = vld [vmem:[%s2788_s0 + $0x1d8] sm:$0xff]  ;;  %v2440_v48 = vld [vmem:[%s2788_s0 + $0x2e8] sm:$0xff] }
  0x2a   :  { %232 = vxpose.xlu1.b32.cont [11/13] (short) (narrow) %v31_v50, 8  ;;  %122 = vxpose.xlu0.b32.cont [11/13] (short) (narrow) %v18_v52, 8  ;;  %v2452_v50 = vld [vmem:[%s2788_s0 + $0x2f0] sm:$0xff]  ;;  %v2464_v52 = vld [vmem:[%s2788_s0 + $0x2f8] sm:$0xff] }
  0x2e   :  { %233 = vxpose.xlu1.b32.cont [12/13] (short) (narrow) %v32_v51, 8  ;;  %123 = vxpose.xlu0.b32.cont [12/13] (short) (narrow) %v19_v54, 8  ;;  %v2457_v51 = vld [vmem:[%s2788_s0 + $0x288] sm:$0xff]  ;;  %v2476_v54 = vld [vmem:[%s2788_s0 + $0x300] sm:$0xff] }
  0x32   :  { %234 = vxpose.xlu1.b32.end [13/13] (short) (narrow) %v33_v56, 8  ;;  %124 = vxpose.xlu0.b32.end [13/13] (short) (narrow) %v20_v57, 8  ;;  %v2488_v56 = vld [vmem:[%s2788_s0 + $0x308] sm:$0xff]  ;;  %v2493_v57 = vld [vmem:[%s2788_s0 + $0x2a0] sm:$0xff] }
  0x36   :  { %438 = vxpose.xlu1.b32.start [1/13] (short) (narrow) %v1986_v22, 8  ;;  %330 = vxpose.xlu0.b32.start [1/13] (short) (narrow) %v2000_v25, 8  ;;  %v2317_v25 = vld [vmem:[%s2788_s0 + $0x1e0] sm:$0xff]  ;;  %v2336_v22 = vld [vmem:[%s2788_s0 + $0x250] sm:$0xff] }
  0x3a   :  { %439 = vxpose.xlu1.b32.cont [2/13] (short) (narrow) %v1995_v24, 8  ;;  %331 = vxpose.xlu0.b32.cont [2/13] (short) (narrow) %v2005_v26, 8  ;;  %v2341_v24 = vld [vmem:[%s2788_s0 + $0x1e8] sm:$0xff]  ;;  %v1811_v26 = vpack.c.bf16 %v2134_v60, %v2122_v58 }
  0x3e   :  { %440 = vxpose.xlu1.b32.cont [3/13] (short) (narrow) %v2017_v30, 8  ;;  %332 = vxpose.xlu0.b32.cont [3/13] (short) (narrow) %v2029_v33, 8  ;;  %v2365_v30 = vld [vmem:[%s2788_s0 + $0x1f0] sm:$0xff]  ;;  %v1796_v33 = vpack.c.bf16 %v2163_v1, %v2151_v63 }
  0x42   :  { %441 = vxpose.xlu1.b32.cont [4/13] (short) (narrow) %v2022_v31, 8  ;;  %333 = vxpose.xlu0.b32.cont [4/13] (short) (narrow) %v2036_v35, 8  ;;  %v1814_v31 = vpack.c.bf16 %v2158_v0, %v2146_v62  ;;  %v2383_v35 = vld [vmem:[%s2788_s0 + $0x1f8] sm:$0xff] }
  0x46   :  { %442 = vxpose.xlu1.b32.cont [5/13] (short) (narrow) %v2041_v36, 8  ;;  %334 = vxpose.xlu0.b32.cont [5/13] (short) (narrow) %v2048_v39, 8  ;;  %v1817_v36 = vpack.c.bf16 %v2182_v5, %v2170_v2  ;;  %v2396_v39 = vld [vmem:[%s2788_s0 + $0x268] sm:$0xf] }
  0x4a   :  { %443 = vxpose.xlu1.b32.cont [6/13] (short) (narrow) %v2053_v40, 8  ;;  %335 = vxpose.xlu0.b32.cont [6/13] (short) (narrow) %v2058_v41, 8  ;;  %v2401_v40 = vld [vmem:[%s2788_s0 + $0x200] sm:$0xf]  ;;  %v2410_v41 = vld [vmem:[%s2788_s0 + $0x2d8] sm:$0xff] }
  0x4e   :  { %444 = vxpose.xlu1.b32.cont [7/13] (short) (narrow) %v2122_v58, 8  ;;  %336 = vxpose.xlu0.b32.cont [7/13] (short) (narrow) %v2127_v59, 8  ;;  %v1838_v58 = vpack.c.bf16 %v2218_v12, %v2206_v10 }
  0x52   :  { %445 = vxpose.xlu1.b32.cont [8/13] (short) (narrow) %v2134_v60, 8  ;;  %337 = vxpose.xlu0.b32.cont [8/13] (short) (narrow) %v2139_v61, 8 }
  0x56   :  { %446 = vxpose.xlu1.b32.cont [9/13] (short) (narrow) %v2146_v62, 8  ;;  %338 = vxpose.xlu0.b32.cont [9/13] (short) (narrow) %v2151_v63, 8  ;;  %v2505_v62 = vld [vmem:[%s2788_s0 + $0x310] sm:$0xff]  ;;  %v2510_v63 = vld [vmem:[%s2788_s0 + $0x2a8] sm:$0xff] }
  0x5a   :  { %447 = vxpose.xlu1.b32.cont [10/13] (short) (narrow) %v2158_v0, 8  ;;  %339 = vxpose.xlu0.b32.cont [10/13] (short) (narrow) %v2163_v1, 8  ;;  %v1841_v0 = vpack.c.bf16 %v2242_v16, %v2230_v14  ;;  %v1823_v1 = vpack.c.bf16 %v2247_v17, %v2235_v15 }
  0x5e   :  { %448 = vxpose.xlu1.b32.cont [11/13] (short) (narrow) %v2170_v2, 8  ;;  %340 = vxpose.xlu0.b32.cont [11/13] (short) (narrow) %v2175_v4, 8  ;;  %v2524_v2 = vld [vmem:[%s2788_s0 + $0x318] sm:$0xff] }
  0x62   :  { %449 = vxpose.xlu1.b32.cont [12/13] (short) (narrow) %v2182_v5, 8  ;;  %341 = vxpose.xlu0.b32.cont [12/13] (short) (narrow) %v2187_v6, 8  ;;  %v1844_v5 = vpack.c.bf16 %v2266_v20, %v2254_v18 }
  0x66   :  { %450 = vxpose.xlu1.b32.end [13/13] (short) (narrow) %v2194_v7, 8  ;;  %342 = vxpose.xlu0.b32.end [13/13] (short) (narrow) %v2199_v8, 8 }
  0x6a   :  { %654 = vxpose.xlu1.b32.start [1/13] (short) (narrow) %v2206_v10, 8  ;;  %546 = vxpose.xlu0.b32.start [1/13] (short) (narrow) %v2211_v11, 8  ;;  %v1847_v10 = vpack.c.bf16 %v2292_v44, %v2278_v23 }
  0x6e   :  { %655 = vxpose.xlu1.b32.cont [2/13] (short) (narrow) %v2218_v12, 8  ;;  %547 = vxpose.xlu0.b32.cont [2/13] (short) (narrow) %v2223_v13, 8  ;;  %v2564_v12 = vld [vmem:[%s2788_s0 + $0x328] sm:$0xff] }
  0x72   :  { %656 = vxpose.xlu1.b32.cont [3/13] (short) (narrow) %v2230_v14, 8  ;;  %548 = vxpose.xlu0.b32.cont [3/13] (short) (narrow) %v2235_v15, 8  ;;  %v1850_v14 = vpack.c.bf16 %v2336_v22, %v2312_v46  ;;  %v1832_v15 = vpack.c.bf16 %v2341_v24, %v2317_v25 }
  0x76   :  { %657 = vxpose.xlu1.b32.cont [4/13] (short) (narrow) %v2242_v16, 8  ;;  %549 = vxpose.xlu0.b32.cont [4/13] (short) (narrow) %v2247_v17, 8  ;;  %v110_v16 = vld [vmem:[%s2788_s0 + $0x330] sm:$0xff]  ;;  %v97_v17 = vld [vmem:[%s2788_s0 + $0x2c8] sm:$0xff] }
  0x7a   :  { %658 = vxpose.xlu1.b32.cont [5/13] (short) (narrow) %v2254_v18, 8  ;;  %550 = vxpose.xlu0.b32.cont [5/13] (short) (narrow) %v2259_v19, 8 }
  0x7e   :  { %659 = vxpose.xlu1.b32.cont [6/13] (short) (narrow) %v2266_v20, 8  ;;  %551 = vxpose.xlu0.b32.cont [6/13] (short) (narrow) %v2271_v21, 8  ;;  %v111_v20 = vld [vmem:[%s2788_s0 + $0x338] sm:$0xf] }
  0x82   :  { %660 = vxpose.xlu1.b32.cont [7/13] (short) (narrow) %v2278_v23, 8  ;;  %v238_v32 = vpop.trf.xlu1  ;;  %552 = vxpose.xlu0.b32.cont [7/13] (short) (narrow) %v2283_v27, 8  ;;  %v128_v37 = vpop.trf.xlu0 }
  0x83   :  { %1542 = vmatmul.mubr.msk.f32.vlgmr.msra.gmra.mrb[0].mxu0 %vm144_vm2, %v128_v37  ;;  %1571 = vmatmul.mubr.msk.f32.vlgmr.msra.gmra.mrb[0].mxu1 %vm144_vm2, %v238_v32 }
  0x84   :  { %1785 = vmatpush3.bf16.msra.mxu0 %v1784_v29  ;;  %1803 = vmatpush3.bf16.msra.mxu1 %v1802_v28  ;;  %v1793_v28 = vpack.c.bf16 %v2139_v61, %v2127_v59  ;;  %v2360_v29 = vld [vmem:[%s2788_s0 + $0x258] sm:$0xff]  ;;  %v1820_v59 = vpack.c.bf16 %v2223_v13, %v2211_v11  ;;  %v1829_v11 = vpack.c.bf16 %v2297_v45, %v2283_v27  ;;  %v2569_v13 = vld [vmem:[%s2788_s0 + $0x2c0] sm:$0xff] }
  0x85   :  { %1786 = vmatprep.subr.bf16.mxu0 %v1916_v3  ;;  %1804 = vmatprep.subr.bf16.mxu1 %v1916_v3 }
  0x86   :  { %661 = vxpose.xlu1.b32.cont [8/13] (short) (narrow) %v2292_v44, 8  ;;  %553 = vxpose.xlu0.b32.cont [8/13] (short) (narrow) %v2297_v45, 8  ;;  %v1877_v44 = vpack.c.bf16 %v2452_v50, %v2440_v48  ;;  %v1859_v45 = vpack.c.bf16 %v2457_v51, %v2445_v49 }
  0x87   :  { %1599 = vmatprep.mubr.msk.f32.mxu0 %vm1917_vm0, %v1918_v9  ;;  %1628 = vmatprep.mubr.msk.f32.mxu1 %vm1917_vm0, %v1918_v9 }
  0x88   :  { %1788 = vmatpush3.bf16.msra.mxu0 %v1787_v38  ;;  %1806 = vmatpush3.bf16.msra.mxu1 %v1805_v34  ;;  %v2378_v34 = vld [vmem:[%s2788_s0 + $0x260] sm:$0xff]  ;;  %v1799_v38 = vpack.c.bf16 %v2187_v6, %v2175_v4  ;;  %v2529_v4 = vld [vmem:[%s2788_s0 + $0x2b0] sm:$0xff]  ;;  %v1826_v6 = vpack.c.bf16 %v2271_v21, %v2259_v19  ;;  %v1835_v19 = vpack.c.bf16 %v2383_v35, %v2365_v30 }
  0x89   :  { %1789 = vmatprep.subr.bf16.mxu0 %v1916_v3  ;;  %1807 = vmatprep.subr.bf16.mxu1 %v1916_v3  ;;  %v1853_v18 = vpack.c.bf16 %v2378_v34, %v2360_v29  ;;  %v98_v21 = vld [vmem:[%s2788_s0 + $0x2d0] sm:$0xf] }
  0x8a   :  { %662 = vxpose.xlu1.b32.cont [9/13] (short) (narrow) %v2312_v46, 8  ;;  %554 = vxpose.xlu0.b32.cont [9/13] (short) (narrow) %v2317_v25, 8  ;;  %v1880_v46 = vpack.c.bf16 %v2476_v54, %v2464_v52  ;;  %v1862_v25 = vpack.c.bf16 %v2481_v55, %v2469_v53 }
  0x8c   :  { %1791 = vmatpush3.bf16.msra.mxu0 %v1790_v43  ;;  %1809 = vmatpush3.bf16.msra.mxu1 %v1808_v42  ;;  %v2415_v42 = vld [vmem:[%s2788_s0 + $0x270] sm:$0xff]  ;;  %v2428_v43 = vld [vmem:[%s2788_s0 + $0x2e0] sm:$0xff] }
  0x8d   :  { %1792 = vmatprep.subr.bf16.mxu0 %v1916_v3  ;;  %1810 = vmatprep.subr.bf16.mxu1 %v1916_v3  ;;  %v1874_v23 = vpack.c.bf16 %v2428_v43, %v2410_v41  ;;  %v1856_v27 = vpack.c.bf16 %v2433_v47, %v2415_v42 }
  0x8e   :  { %663 = vxpose.xlu1.b32.cont [10/13] (short) (narrow) %v2336_v22, 8  ;;  %555 = vxpose.xlu0.b32.cont [10/13] (short) (narrow) %v2341_v24, 8  ;;  %v1883_v22 = vpack.c.bf16 %v2505_v62, %v2488_v56  ;;  %v1865_v24 = vpack.c.bf16 %v2510_v63, %v2493_v57 }
  0x90   :  { %1794 = vmatpush3.bf16.msra.mxu0 %v1793_v28  ;;  %1812 = vmatpush3.bf16.msra.mxu1 %v1811_v26 }
  0x91   :  { %1795 = vmatprep.subr.bf16.mxu0 %v1916_v3  ;;  %1813 = vmatprep.subr.bf16.mxu1 %v1916_v3 }
  0x92   :  { %664 = vxpose.xlu1.b32.cont [11/13] (short) (narrow) %v2360_v29, 8  ;;  %556 = vxpose.xlu0.b32.cont [11/13] (short) (narrow) %v2365_v30, 8  ;;  %v1889_v29 = vpack.c.bf16 %v110_v16, %v2564_v12  ;;  %v1871_v30 = vpack.c.bf16 %v97_v17, %v2569_v13 }
  0x94   :  { %1797 = vmatpush3.bf16.msra.mxu0 %v1796_v33  ;;  %1815 = vmatpush3.bf16.msra.mxu1 %v1814_v31 }
  0x95   :  { %1798 = vmatprep.subr.bf16.mxu0 %v1916_v3  ;;  %1816 = vmatprep.subr.bf16.mxu1 %v1916_v3 }
  0x96   :  { %665 = vxpose.xlu1.b32.cont [12/13] (short) (narrow) %v2378_v34, 8  ;;  %557 = vxpose.xlu0.b32.cont [12/13] (short) (narrow) %v2383_v35, 8  ;;  %v978_v34 = vlaneseq }
  0x98   :  { %1800 = vmatpush3.bf16.msra.mxu0 %v1799_v38  ;;  %1818 = vmatpush3.bf16.msra.mxu1 %v1817_v36  ;;  %v2649_v35 = vshrl.u32 %v978_v34, 7 }
  0x99   :  { %1597 = vmatprep.subr.mxu0 %v1918_v9  ;;  %1626 = vmatprep.subr.mxu1 %v1918_v9 }
  0x9a   :  { %666 = vxpose.xlu1.b32.end [13/13] (short) (narrow) %v2396_v39, 8  ;;  %558 = vxpose.xlu0.b32.end [13/13] (short) (narrow) %v2401_v40, 8 }
  0x9c   :  { %1598 = vmatpush3.msk.msra.mxu0 %vm148_vm1, %v2199_v8  ;;  %1627 = vmatpush3.msk.msra.mxu1 %vm148_vm1, %v2194_v7  ;;  %v2546_v7 = vld [vmem:[%s2788_s0 + $0x320] sm:$0xff]  ;;  %v2551_v8 = vld [vmem:[%s2788_s0 + $0x2b8] sm:$0xff] }
  0x9d   :  { %1819 = vmatprep.subr.bf16.mxu0 %v1916_v3  ;;  %1837 = vmatprep.subr.bf16.mxu1 %v1916_v3  ;;  %v1886_v26 = vpack.c.bf16 %v2546_v7, %v2524_v2  ;;  %v1868_v28 = vpack.c.bf16 %v2551_v8, %v2529_v4 }
  0x9e   :  { %870 = vxpose.xlu1.b32.start [1/13] (short) (narrow) %v2410_v41, 8  ;;  %762 = vxpose.xlu0.b32.start [1/13] (short) (narrow) %v2415_v42, 8 }
  0xa2   :  { %871 = vxpose.xlu1.b32.cont [2/13] (short) (narrow) %v2428_v43, 8  ;;  %763 = vxpose.xlu0.b32.cont [2/13] (short) (narrow) %v2433_v47, 8 }
  0xa6   :  { %872 = vxpose.xlu1.b32.cont [3/13] (short) (narrow) %v2440_v48, 8  ;;  %764 = vxpose.xlu0.b32.cont [3/13] (short) (narrow) %v2445_v49, 8 }
  0xaa   :  { %873 = vxpose.xlu1.b32.cont [4/13] (short) (narrow) %v2452_v50, 8  ;;  %765 = vxpose.xlu0.b32.cont [4/13] (short) (narrow) %v2457_v51, 8 }
  0xae   :  { %874 = vxpose.xlu1.b32.cont [5/13] (short) (narrow) %v2464_v52, 8  ;;  %766 = vxpose.xlu0.b32.cont [5/13] (short) (narrow) %v2469_v53, 8 }
  0xb2   :  { %875 = vxpose.xlu1.b32.cont [6/13] (short) (narrow) %v2476_v54, 8  ;;  %767 = vxpose.xlu0.b32.cont [6/13] (short) (narrow) %v2481_v55, 8 }
  0xb6   :  { %876 = vxpose.xlu1.b32.cont [7/13] (short) (narrow) %v2488_v56, 8  ;;  %768 = vxpose.xlu0.b32.cont [7/13] (short) (narrow) %v2493_v57, 8  ;;  %v346_v60 = vpop.trf.xlu0  ;;  %v454_v61 = vpop.trf.xlu1 }
  0xb7   :  { %1600 = vmatmul.mubr.msk.f32.vlgmr.msra.gmra.mrb[2].mxu0 %vm144_vm2, %v346_v60  ;;  %1629 = vmatmul.mubr.msk.f32.vlgmr.msra.gmra.mrb[2].mxu1 %vm144_vm2, %v454_v61 }
  0xb8   :  { %1821 = vmatpush3.bf16.msra.mxu0 %v1820_v59  ;;  %1839 = vmatpush3.bf16.msra.mxu1 %v1838_v58 }
  0xb9   :  { %1822 = vmatprep.subr.bf16.mxu0 %v1916_v3  ;;  %1840 = vmatprep.subr.bf16.mxu1 %v1916_v3 }
  0xba   :  { %877 = vxpose.xlu1.b32.cont [8/13] (short) (narrow) %v2505_v62, 8  ;;  %769 = vxpose.xlu0.b32.cont [8/13] (short) (narrow) %v2510_v63, 8 }
  0xbb   :  { %1686 = vmatprep.mubr.msk.f32.mxu1 %vm1917_vm0, %v1918_v9  ;;  %1657 = vmatprep.mubr.msk.f32.mxu0 %vm1917_vm0, %v1918_v9 }
  0xbc   :  { %1824 = vmatpush3.bf16.msra.mxu0 %v1823_v1  ;;  %1842 = vmatpush3.bf16.msra.mxu1 %v1841_v0 }
  0xbd   :  { %1825 = vmatprep.subr.bf16.mxu0 %v1916_v3  ;;  %1843 = vmatprep.subr.bf16.mxu1 %v1916_v3 }
  0xbe   :  { %878 = vxpose.xlu1.b32.cont [9/13] (short) (narrow) %v2524_v2, 8  ;;  %770 = vxpose.xlu0.b32.cont [9/13] (short) (narrow) %v2529_v4, 8 }
  0xc0   :  { %1827 = vmatpush3.bf16.msra.mxu0 %v1826_v6  ;;  %1845 = vmatpush3.bf16.msra.mxu1 %v1844_v5 }
  0xc1   :  { %1828 = vmatprep.subr.bf16.mxu0 %v1916_v3  ;;  %1846 = vmatprep.subr.bf16.mxu1 %v1916_v3 }
  0xc2   :  { %879 = vxpose.xlu1.b32.cont [10/13] (short) (narrow) %v2546_v7, 8  ;;  %771 = vxpose.xlu0.b32.cont [10/13] (short) (narrow) %v2551_v8, 8 }
  0xc4   :  { %1830 = vmatpush3.bf16.msra.mxu0 %v1829_v11  ;;  %1848 = vmatpush3.bf16.msra.mxu1 %v1847_v10 }
  0xc5   :  { %1831 = vmatprep.subr.bf16.mxu0 %v1916_v3  ;;  %1849 = vmatprep.subr.bf16.mxu1 %v1916_v3 }
  0xc6   :  { %880 = vxpose.xlu1.b32.cont [11/13] (short) (narrow) %v2564_v12, 8  ;;  %772 = vxpose.xlu0.b32.cont [11/13] (short) (narrow) %v2569_v13, 8 }
  0xc8   :  { %1833 = vmatpush3.bf16.msra.mxu0 %v1832_v15  ;;  %1851 = vmatpush3.bf16.msra.mxu1 %v1850_v14 }
  0xc9   :  { %1834 = vmatprep.subr.bf16.mxu0 %v1916_v3  ;;  %1852 = vmatprep.subr.bf16.mxu1 %v1916_v3 }
  0xca   :  { %881 = vxpose.xlu1.b32.cont [12/13] (short) (narrow) %v110_v16, 8  ;;  %773 = vxpose.xlu0.b32.cont [12/13] (short) (narrow) %v97_v17, 8 }
  0xcc   :  { %1836 = vmatpush3.bf16.msra.mxu0 %v1835_v19  ;;  %1854 = vmatpush3.bf16.msra.mxu1 %v1853_v18 }
  0xcd   :  { %1655 = vmatprep.subr.mxu0 %v1918_v9  ;;  %1684 = vmatprep.subr.mxu1 %v1918_v9 }
  0xce   :  { %882 = vxpose.xlu1.b32.end [13/13] (short) (narrow) %v111_v20, 8  ;;  %774 = vxpose.xlu0.b32.end [13/13] (short) (narrow) %v98_v21, 8 }
  0xd0   :  { %1685 = vmatpush3.msk.msra.mxu1 %vm148_vm1, %v2396_v39  ;;  %1656 = vmatpush3.msk.msra.mxu0 %vm148_vm1, %v2401_v40 }
  0xd1   :  { %1855 = vmatprep.subr.bf16.mxu0 %v1916_v3  ;;  %1873 = vmatprep.subr.bf16.mxu1 %v1916_v3 }
  0xea   :  { %v670_v32 = vpop.trf.xlu1  ;;  %v562_v37 = vpop.trf.xlu0 }
  0xeb   :  { %1658 = vmatmul.mubr.msk.f32.vlgmr.msra.gmra.mrb[4].mxu0 %vm144_vm2, %v562_v37  ;;  %1687 = vmatmul.mubr.msk.f32.vlgmr.msra.gmra.mrb[4].mxu1 %vm144_vm2, %v670_v32 }
  0xec   :  { %1857 = vmatpush3.bf16.msra.mxu0 %v1856_v27  ;;  %1875 = vmatpush3.bf16.msra.mxu1 %v1874_v23 }
  0xed   :  { %1858 = vmatprep.subr.bf16.mxu0 %v1916_v3  ;;  %1876 = vmatprep.subr.bf16.mxu1 %v1916_v3 }
  0xee   :  { %1744 = vmatprep.mubr.msk.f32.mxu1 %vm1917_vm0, %v1918_v9  ;;  %1715 = vmatprep.mubr.msk.f32.mxu0 %vm1917_vm0, %v1918_v9 }
  0xf0   :  { %1860 = vmatpush3.bf16.msra.mxu0 %v1859_v45  ;;  %1878 = vmatpush3.bf16.msra.mxu1 %v1877_v44 }
  0xf1   :  { %1861 = vmatprep.subr.bf16.mxu0 %v1916_v3  ;;  %1879 = vmatprep.subr.bf16.mxu1 %v1916_v3 }
  0xf4   :  { %1863 = vmatpush3.bf16.msra.mxu0 %v1862_v25  ;;  %1881 = vmatpush3.bf16.msra.mxu1 %v1880_v46 }
  0xf5   :  { %1864 = vmatprep.subr.bf16.mxu0 %v1916_v3  ;;  %1882 = vmatprep.subr.bf16.mxu1 %v1916_v3 }
  0xf8   :  { %1866 = vmatpush3.bf16.msra.mxu0 %v1865_v24  ;;  %1884 = vmatpush3.bf16.msra.mxu1 %v1883_v22 }
  0xf9   :  { %1867 = vmatprep.subr.bf16.mxu0 %v1916_v3  ;;  %1885 = vmatprep.subr.bf16.mxu1 %v1916_v3 }
  0xfc   :  { %1869 = vmatpush3.bf16.msra.mxu0 %v1868_v28  ;;  %1887 = vmatpush3.bf16.msra.mxu1 %v1886_v26 }
  0xfd   :  { %1870 = vmatprep.subr.bf16.mxu0 %v1916_v3  ;;  %1888 = vmatprep.subr.bf16.mxu1 %v1916_v3  ;;  %v981_v3 = vand.u32 127, %v978_v34 }
  0xff   :  { %vm2652_vm3 = vcmp.eq.s32.totalorder %v2649_v35, %v981_v3  ;;  %v2687_v0 = vsub.s32 %v981_v3, %v2649_v35 }
 0x100   :  { %1872 = vmatpush3.bf16.msra.mxu0 %v1871_v30  ;;  %1890 = vmatpush3.bf16.msra.mxu1 %v1889_v29  ;;  %vm2705_vm6 = vmxor %vm2652_vm3, %vm1919_vm5 }
 0x101   :  { %1713 = vmatprep.subr.mxu0 %v1918_v9  ;;  %1742 = vmatprep.subr.mxu1 %v1918_v9 }
 0x104   :  { %1743 = vmatpush3.msk.msra.mxu1 %vm148_vm1, %v111_v20  ;;  %1714 = vmatpush3.msk.msra.mxu0 %vm148_vm1, %v98_v21 }
 0x11e   :  { %v886_v31 = vpop.trf.xlu1  ;;  %v778_v33 = vpop.trf.xlu0 }
 0x11f   :  { %1716 = vmatmul.mubr.msk.f32.vlgmr.msra.gmra.mrb[6].mxu0 %vm144_vm2, %v778_v33  ;;  %1745 = vmatmul.mubr.msk.f32.vlgmr.msra.gmra.mrb[6].mxu1 %vm144_vm2, %v886_v31 }
 0x156   :  { %v218_v9 = vpop.f32.mrb[0].mxu0  ;;  %v326_v38 = vpop.f32.mrb[0].mxu1 }
 0x157   :  { %v986_v39 = vsel %vm2652_vm3, %v326_v38, 0.0  ;;  %v985_v40 = vsel %vm2652_vm3, %v218_v9, 0.0  ;;  %v1543_v41 = vpop.f32.mrb[1].mxu0  ;;  %v1572_v42 = vpop.f32.mrb[1].mxu1  ;;  %v1084_v6 = vmul.f32 2.0, %v218_v9  ;;  %v1085_v7 = vmul.f32 2.0, %v326_v38 }
 0x158   :  { %v997_v43 = vsel %vm993_vm4, %v986_v39, 0.0  ;;  %v994_v47 = vsel %vm993_vm4, %v985_v40, 0.0 }
 0x159   :  { %998 = vadd.xlane.f32.xlu1 %v997_v43  ;;  %995 = vadd.xlane.f32.xlu0 %v994_v47 }
 0x18a   :  { %v2662_v48 = vpop.f32.mrb[2].mxu0  ;;  %v2664_v49 = vpop.f32.mrb[2].mxu1 }
 0x18b   :  { %v987_v50 = vsel %vm2652_vm3, %v2662_v48, 0.0  ;;  %v988_v51 = vsel %vm2652_vm3, %v2664_v49, 0.0  ;;  %v1601_v52 = vpop.f32.mrb[3].mxu0  ;;  %v1630_v53 = vpop.f32.mrb[3].mxu1  ;;  %v1086_v36 = vmul.f32 2.0, %v2662_v48  ;;  %v1087_v41 = vmul.f32 2.0, %v2664_v49 }
 0x18c   :  { %v1000_v54 = vsel %vm993_vm4, %v987_v50, 0.0  ;;  %v1003_v55 = vsel %vm993_vm4, %v988_v51, 0.0 }
 0x18d   :  { %1001 = vadd.xlane.f32.xlu1 %v1000_v54 }
 0x191   :  { %1004 = vadd.xlane.f32.xlu1 %v1003_v55 }
 0x1be   :  { %v2674_v56 = vpop.f32.mrb[4].mxu0  ;;  %v2676_v57 = vpop.f32.mrb[4].mxu1 }
 0x1bf   :  { %v990_v58 = vsel %vm2652_vm3, %v2676_v57, 0.0  ;;  %v989_v59 = vsel %vm2652_vm3, %v2674_v56, 0.0  ;;  %v1659_v60 = vpop.f32.mrb[5].mxu0  ;;  %v1688_v61 = vpop.f32.mrb[5].mxu1 }
 0x1c0   :  { %v1009_v62 = vsel %vm993_vm4, %v990_v58, 0.0  ;;  %v1006_v63 = vsel %vm993_vm4, %v989_v59, 0.0 }
 0x1c1   :  { %1010 = vadd.xlane.f32.xlu1 %v1009_v62  ;;  %1007 = vadd.xlane.f32.xlu0 %v1006_v63 }
 0x1e6   :  { %v999_v1 = vpop.xlane.xlu1 %998  ;;  %v996_v2 = vpop.xlane.xlu0 %995 }
 0x1e7   :  { %v1033_v4 = vrot.slane %v999_v1, %v2687_v0  ;;  %v1029_v5 = vrot.slane %v996_v2, %v2687_v0 }
 0x1e9   :  { %v1077_v8 = vadd.f32 %v1033_v4, %v999_v1  ;;  %v1076_v10 = vadd.f32 %v1029_v5, %v996_v2 }
 0x1eb   :  { %v1093_v11 = vsub.f32 %v1077_v8, %v1085_v7  ;;  %v1092_v12 = vsub.f32 %v1076_v10, %v1084_v6  ;;  %v1088_v7 = vmul.f32 2.0, %v2674_v56  ;;  %v1089_v8 = vmul.f32 2.0, %v2676_v57 }
 0x1ed   :  { %v1101_v13 = vmax.f32 %v1093_v11, 0.0  ;;  %v1100_v14 = vmax.f32 %v1092_v12, 0.0 }
 0x1ef   :  { %1898 = vrsqrt.f32 %v1101_v13  ;;  %vm1118_vm7 = vcmp.eq.f32.partialorder %v1101_v13, inf  ;;  %v1121_v45 = vand.u32 2147483648, %v1101_v13  ;;  %vm1120_vm8 = vcmp.eq.f32.partialorder %v1101_v13, 0.0 }
 0x1f0   :  { %1900 = vrsqrt.f32 %v1100_v14  ;;  %vm1111_vm9 = vcmp.eq.f32.partialorder %v1100_v14, inf  ;;  %v1114_v22 = vand.u32 2147483648, %v1100_v14  ;;  %vm1113_vm10 = vcmp.eq.f32.partialorder %v1100_v14, 0.0 }
 0x1f2   :  { %v2691_v15 = vpop.f32.mrb[6].mxu0  ;;  %v2693_v16 = vpop.f32.mrb[6].mxu1 }
 0x1f3   :  { %v1717_v17 = vpop.f32.mrb[7].mxu0  ;;  %v1746_v18 = vpop.f32.mrb[7].mxu1  ;;  %v992_v19 = vsel %vm2652_vm3, %v2693_v16, 0.0  ;;  %v991_v20 = vsel %vm2652_vm3, %v2691_v15, 0.0 }
 0x1f4   :  { %v1015_v21 = vsel %vm993_vm4, %v992_v19, 0.0  ;;  %v1012_v23 = vsel %vm993_vm4, %v991_v20, 0.0 }
 0x1f5   :  { %1016 = vadd.xlane.f32.xlu1 %v1015_v21  ;;  %1013 = vadd.xlane.f32.xlu0 %v1012_v23 }
 0x1f9   :  { %v1899_v27 = vpop.eup %1898 }
 0x1fa   :  { %v1901_v32 = vpop.eup %1900  ;;  %v1117_v37 = vmul.f32 %v1899_v27, %v1101_v13 }
 0x1fb   :  { %v1110_v46 = vmul.f32 %v1901_v32, %v1100_v14 }
 0x1fc   :  { %v1119_v25 = vsel %vm1118_vm7, %v1101_v13, %v1117_v37 }
 0x1fd   :  { %v1122_v24 = vsel %vm1120_vm8, %v1121_v45, %v1119_v25  ;;  %v1112_v26 = vsel %vm1111_vm9, %v1100_v14, %v1110_v46  ;;  %vm1058_vm9 = vcmask 1041409  }
 0x1fe   :  { %v1168_v28 = vsel %vm2705_vm6, %v1122_v24, 0.0  ;;  %v1115_v29 = vsel %vm1113_vm10, %v1114_v22, %v1112_v26  ;;  %vm1059_vm10 = vcmask 1042434  }
 0x1ff   :  { %v1178_v30 = vsel %vm993_vm4, %v1168_v28, 0.0  ;;  %v1167_v31 = vsel %vm2705_vm6, %v1115_v29, 0.0 }
 0x200   :  { %1179 = vadd.xlane.f32.xlu1 %v1178_v30  ;;  %v1175_v33 = vsel %vm993_vm4, %v1167_v31, 0.0  ;;  %v1090_v30 = vmul.f32 2.0, %v2691_v15  ;;  %v1091_v31 = vmul.f32 2.0, %v2693_v16 }
 0x201   :  { %1176 = vadd.xlane.f32.xlu0 %v1175_v33 }
 0x21a   :  { %v1002_v34 = vpop.xlane.xlu1 %1001 }
 0x21b   :  { %v1037_v3 = vrot.slane %v1002_v34, %v2687_v0 }
 0x21d   :  { %v1078_v9 = vadd.f32 %v1037_v3, %v1002_v34 }
 0x21e   :  { %v1005_v38 = vpop.xlane.xlu1 %1004 }
 0x21f   :  { %v1094_v39 = vsub.f32 %v1078_v9, %v1086_v36  ;;  %v1041_v40 = vrot.slane %v1005_v38, %v2687_v0 }
 0x221   :  { %v1102_v42 = vmax.f32 %v1094_v39, 0.0  ;;  %v1079_v43 = vadd.f32 %v1041_v40, %v1005_v38 }
 0x223   :  { %v1095_v47 = vsub.f32 %v1079_v43, %v1087_v41  ;;  %1902 = vrsqrt.f32 %v1102_v42  ;;  %vm1125_vm11 = vcmp.eq.f32.partialorder %v1102_v42, inf  ;;  %v1128_v53 = vand.u32 2147483648, %v1102_v42 }
 0x224   :  { %vm1127_vm12 = vcmp.eq.f32.partialorder %v1102_v42, 0.0 }
 0x225   :  { %v1103_v50 = vmax.f32 %v1095_v47, 0.0 }
 0x227   :  { %1904 = vrsqrt.f32 %v1103_v50  ;;  %vm1132_vm13 = vcmp.eq.f32.partialorder %v1103_v50, inf  ;;  %v1135_v60 = vand.u32 2147483648, %v1103_v50  ;;  %vm1134_vm14 = vcmp.eq.f32.partialorder %v1103_v50, 0.0 }
 0x22d   :  { %v1903_v51 = vpop.eup %1902 }
 0x22e   :  { %v1124_v52 = vmul.f32 %v1903_v51, %v1102_v42 }
 0x230   :  { %v1126_v54 = vsel %vm1125_vm11, %v1102_v42, %v1124_v52  ;;  %vm1245_vm11 = vcmask 1045509  }
 0x231   :  { %v1905_v48 = vpop.eup %1904  ;;  %v1129_v55 = vsel %vm1127_vm12, %v1128_v53, %v1126_v54  ;;  %vm1247_vm12 = vcmask 1046534  }
 0x232   :  { %v1169_v58 = vsel %vm2705_vm6, %v1129_v55, 0.0  ;;  %v1131_v59 = vmul.f32 %v1905_v48, %v1103_v50 }
 0x233   :  { %v1181_v49 = vsel %vm993_vm4, %v1169_v58, 0.0 }
 0x234   :  { %1182 = vadd.xlane.f32.xlu0 %v1181_v49  ;;  %v1133_v61 = vsel %vm1132_vm13, %v1103_v50, %v1131_v59  ;;  %vm1249_vm13 = vcmask 1047559  }
 0x235   :  { %v1136_v62 = vsel %vm1134_vm14, %v1135_v60, %v1133_v61  ;;  %vm1252_vm14 = vcmask 23552  }
 0x236   :  { %v1170_v63 = vsel %vm2705_vm6, %v1136_v62, 0.0 }
 0x237   :  { %v1184_v1 = vsel %vm993_vm4, %v1170_v63, 0.0 }
 0x238   :  { %1185 = vadd.xlane.f32.xlu1 %v1184_v1 }
 0x24e   :  { %v1011_v2 = vpop.xlane.xlu1 %1010  ;;  %v1008_v4 = vpop.xlane.xlu0 %1007 }
 0x24f   :  { %v1049_v5 = vrot.slane %v1011_v2, %v2687_v0  ;;  %v1045_v6 = vrot.slane %v1008_v4, %v2687_v0 }
 0x251   :  { %v1081_v10 = vadd.f32 %v1049_v5, %v1011_v2  ;;  %v1080_v11 = vadd.f32 %v1045_v6, %v1008_v4 }
 0x253   :  { %v1097_v12 = vsub.f32 %v1081_v10, %v1089_v8  ;;  %v1096_v13 = vsub.f32 %v1080_v11, %v1088_v7 }
 0x255   :  { %v1105_v14 = vmax.f32 %v1097_v12, 0.0  ;;  %v1104_v17 = vmax.f32 %v1096_v13, 0.0 }
 0x257   :  { %1906 = vrsqrt.f32 %v1105_v14  ;;  %vm1146_vm15 = vcmp.eq.f32.partialorder %v1105_v14, inf  ;;  %v1149_v21 = vand.u32 2147483648, %v1105_v14  ;;  %vm1148_vm0 = vcmp.eq.f32.partialorder %v1105_v14, 0.0 }
 0x258   :  { %1908 = vrsqrt.f32 %v1104_v17  ;;  %vm1139_vm1 = vcmp.eq.f32.partialorder %v1104_v17, inf  ;;  %v1142_v56 = vand.u32 2147483648, %v1104_v17  ;;  %vm1141_vm2 = vcmp.eq.f32.partialorder %v1104_v17, 0.0 }
 0x261   :  { %v1907_v18 = vpop.eup %1906 }
 0x262   :  { %v1909_v19 = vpop.eup %1908  ;;  %v1145_v20 = vmul.f32 %v1907_v18, %v1105_v14 }
 0x263   :  { %v1138_v23 = vmul.f32 %v1909_v19, %v1104_v17 }
 0x264   :  { %v1147_v27 = vsel %vm1146_vm15, %v1105_v14, %v1145_v20  ;;  %v1920_v20 = vmov 0  }
 0x265   :  { %v1150_v32 = vsel %vm1148_vm0, %v1149_v21, %v1147_v27  ;;  %v1140_v57 = vsel %vm1139_vm1, %v1104_v17, %v1138_v23  ;;  %1896 = vset.pattern.permute.xlu1 %v1920_v20  ;;  %1897 = vset.pattern.permute.xlu0 %v1920_v20 }
 0x266   :  { %v1172_v37 = vsel %vm2705_vm6, %v1150_v32, 0.0  ;;  %v1143_v45 = vsel %vm1141_vm2, %v1142_v56, %v1140_v57  ;;  %v1268_v57 = vsub.s32 1, %v2649_v35 }
 0x267   :  { %v1190_v46 = vsel %vm993_vm4, %v1172_v37, 0.0  ;;  %v1171_v25 = vsel %vm2705_vm6, %v1143_v45, 0.0  ;;  %v1264_v37 = vsub.s32 0, %v2649_v35 }
 0x268   :  { %1191 = vadd.xlane.f32.xlu1 %v1190_v46  ;;  %v1187_v22 = vsel %vm993_vm4, %v1171_v25, 0.0  ;;  %v1272_v46 = vsub.s32 2, %v2649_v35 }
 0x269   :  { %1188 = vadd.xlane.f32.xlu0 %v1187_v22 }
 0x282   :  { %v1017_v24 = vpop.xlane.xlu1 %1016  ;;  %v1014_v26 = vpop.xlane.xlu0 %1013 }
 0x283   :  { %v1057_v28 = vrot.slane %v1017_v24, %v2687_v0  ;;  %v1053_v29 = vrot.slane %v1014_v26, %v2687_v0 }
 0x285   :  { %v1083_v33 = vadd.f32 %v1057_v28, %v1017_v24  ;;  %v1082_v34 = vadd.f32 %v1053_v29, %v1014_v26  ;;  %v1276_v29 = vsub.s32 3, %v2649_v35 }
 0x287   :  { %v1099_v3 = vsub.f32 %v1083_v33, %v1091_v31  ;;  %v1098_v36 = vsub.f32 %v1082_v34, %v1090_v30  ;;  %v1280_v33 = vsub.s32 4, %v2649_v35 }
 0x289   :  { %v1107_v9 = vmax.f32 %v1099_v3, 0.0  ;;  %v1106_v38 = vmax.f32 %v1098_v36, 0.0  ;;  %v1284_v36 = vsub.s32 5, %v2649_v35 }
 0x28b   :  { %1910 = vrsqrt.f32 %v1107_v9  ;;  %vm1160_vm3 = vcmp.eq.f32.partialorder %v1107_v9, inf  ;;  %v1163_v42 = vand.u32 2147483648, %v1107_v9  ;;  %vm1162_vm5 = vcmp.eq.f32.partialorder %v1107_v9, 0.0 }
 0x28c   :  { %1912 = vrsqrt.f32 %v1106_v38  ;;  %vm1153_vm7 = vcmp.eq.f32.partialorder %v1106_v38, inf  ;;  %v1156_v15 = vand.u32 2147483648, %v1106_v38  ;;  %vm1155_vm8 = vcmp.eq.f32.partialorder %v1106_v38, 0.0 }
 0x28d   :  { %v1180_v58 = vpop.xlane.xlu1 %1179 }
 0x28e   :  { %v1177_v55 = vpop.xlane.xlu0 %1176  ;;  %v1214_v60 = vrot.slane %v1180_v58, %v2687_v0 }
 0x28f   :  { %v1210_v61 = vrot.slane %v1177_v55, %v2687_v0 }
 0x291   :  { %v1239_v4 = vsel %vm1058_vm9, %v1214_v60, %v1210_v61 }
 0x295   :  { %v1911_v39 = vpop.eup %1910 }
 0x296   :  { %v1913_v40 = vpop.eup %1912  ;;  %v1159_v41 = vmul.f32 %v1911_v39, %v1107_v9  ;;  %v1288_v39 = vsub.s32 6, %v2649_v35 }
 0x297   :  { %v1152_v43 = vmul.f32 %v1913_v40, %v1106_v38 }
 0x298   :  { %v1161_v47 = vsel %vm1160_vm3, %v1107_v9, %v1159_v41 }
 0x299   :  { %v1164_v50 = vsel %vm1162_vm5, %v1163_v42, %v1161_v47  ;;  %v1154_v16 = vsel %vm1153_vm7, %v1106_v38, %v1152_v43  ;;  %v1292_v42 = vsub.s32 7, %v2649_v35 }
 0x29a   :  { %v1174_v51 = vsel %vm2705_vm6, %v1164_v50, 0.0  ;;  %v1157_v52 = vsel %vm1155_vm8, %v1156_v15, %v1154_v16 }
 0x29b   :  { %v1196_v53 = vsel %vm993_vm4, %v1174_v51, 0.0  ;;  %v1173_v54 = vsel %vm2705_vm6, %v1157_v52, 0.0  ;;  %vm1241_vm6 = vcmask 1043459  }
 0x29c   :  { %1197 = vadd.xlane.f32.xlu1 %v1196_v53  ;;  %v1193_v48 = vsel %vm993_vm4, %v1173_v54, 0.0  ;;  %vm1243_vm4 = vcmask 1044484  }
 0x29d   :  { %1194 = vadd.xlane.f32.xlu0 %v1193_v48 }
 0x2c1   :  { %v1183_v59 = vpop.xlane.xlu0 %1182 }
 0x2c2   :  { %v1218_v63 = vrot.slane %v1183_v59, %v2687_v0 }
 0x2c4   :  { %v1240_v5 = vsel %vm1059_vm10, %v1218_v63, %v1239_v4 }
 0x2c5   :  { %v1186_v49 = vpop.xlane.xlu1 %1185 }
 0x2c6   :  { %v1222_v44 = vrot.slane %v1186_v49, %v2687_v0 }
 0x2c8   :  { %v1242_v6 = vsel %vm1241_vm6, %v1222_v44, %v1240_v5 }
 0x2f5   :  { %v1192_v1 = vpop.xlane.xlu1 %1191 }
 0x2f6   :  { %v1189_v62 = vpop.xlane.xlu0 %1188  ;;  %v1230_v7 = vrot.slane %v1192_v1, %v2687_v0 }
 0x2f7   :  { %v1226_v2 = vrot.slane %v1189_v62, %v2687_v0 }
 0x2f9   :  { %v1244_v8 = vsel %vm1243_vm4, %v1226_v2, %v1242_v6 }
 0x2fa   :  { %v1246_v14 = vsel %vm1245_vm11, %v1230_v7, %v1244_v8 }
 0x329   :  { %v1198_v10 = vpop.xlane.xlu1 %1197 }
 0x32a   :  { %v1238_v11 = vrot.slane %v1198_v10, %v2687_v0  ;;  %v1195_v12 = vpop.xlane.xlu0 %1194 }
 0x32b   :  { %v1234_v13 = vrot.slane %v1195_v12, %v2687_v0 }
 0x32d   :  { %v1248_v17 = vsel %vm1247_vm12, %v1234_v13, %v1246_v14 }
 0x32e   :  { %v1250_v18 = vsel %vm1249_vm13, %v1238_v11, %v1248_v17 }
 0x32f   :  { %v1253_v19 = vsel %vm1252_vm14, %v1250_v18, 0.0 }
 0x330   :  { %1254 = vadd.xlane.f32.xlu0 %v1253_v19 }
 0x3bd   :  { %v1255_v21 = vpop.xlane.xlu0 %1254 }
 0x3be   :  { %v1256_v23 = vadd.f32 1e-10, %v1255_v21 }
 0x3c0   :  { %1914 = vrcp.f32 %v1256_v23 }
 0x3ca   :  { %v1915_v27 = vpop.eup %1914 }
 0x3cb   :  { %v1258_v56 = vmul.f32 %v1915_v27, %v1256_v23 }
 0x3cd   :  { %v1259_v32 = vsub.f32 2.0, %v1258_v56 }
 0x3cf   :  { %v1260_v45 = vmul.f32 %v1915_v27, %v1259_v32 }
 0x3d1   :  { %v1269_v25 = vrot.slane %v1260_v45, %v1268_v57  ;;  %v1265_v22 = vrot.slane %v1260_v45, %v1264_v37  ;;  %v1273_v28 = vrot.slane %v1260_v45, %v1272_v46  ;;  %v1277_v31 = vrot.slane %v1260_v45, %v1276_v29 }
 0x3d2   :  { %v1281_v3 = vrot.slane %v1260_v45, %v1280_v33  ;;  %v1285_v38 = vrot.slane %v1260_v45, %v1284_v36  ;;  %v1289_v41 = vrot.slane %v1260_v45, %v1288_v39  ;;  %v1293_v47 = vrot.slane %v1260_v45, %v1292_v42 }
 0x3d3   :  { %v1303_v24 = vmul.f32 %v1269_v25, %v1180_v58  ;;  %v1302_v26 = vmul.f32 %v1265_v22, %v1177_v55  ;;  %v1304_v30 = vmul.f32 %v1273_v28, %v1183_v59  ;;  %v1305_v34 = vmul.f32 %v1277_v31, %v1186_v49 }
 0x3d4   :  { %v1306_v9 = vmul.f32 %v1281_v3, %v1189_v62  ;;  %v1307_v40 = vmul.f32 %v1285_v38, %v1192_v1  ;;  %v1308_v43 = vmul.f32 %v1289_v41, %v1195_v12  ;;  %v1309_v15 = vmul.f32 %v1293_v47, %v1198_v10 }
 0x3d5   :  { %1322 = vperm.xlu0 %1897, %v1303_v24   ;;  %1319 = vperm.xlu1 %1896, %v1302_v26  }
 0x3d9   :  { %1325 = vperm.xlu1 %1896, %v1304_v30  }
 0x3dd   :  { %1328 = vperm.xlu1 %1896, %v1305_v34  }
 0x3e1   :  { %1331 = vperm.xlu1 %1896, %v1306_v9  }
 0x3e5   :  { %1334 = vperm.xlu1 %1896, %v1307_v40  }
 0x3e9   :  { %1337 = vperm.xlu1 %1896, %v1308_v43  }
 0x3ed   :  { %1340 = vperm.xlu1 %1896, %v1309_v15  }
 0x454   :  { %v1320_v50 = vpop.permute.xlu1 %1319  ;;  %v1323_v53 = vpop.permute.xlu0 %1322 }
 0x455   :  { %v1349_v48 = vrot.slane %v1323_v53, %v2687_v0  ;;  %v1345_v55 = vrot.slane %v1320_v50, %v2687_v0 }
 0x457   :  { %v1374_v60 = vsel %vm1058_vm9, %v1349_v48, %v1345_v55 }
 0x458   :  { %v1326_v16 = vpop.permute.xlu1 %1325 }
 0x459   :  { %v1353_v58 = vrot.slane %v1326_v16, %v2687_v0 }
 0x45b   :  { %v1375_v62 = vsel %vm1059_vm10, %v1353_v58, %v1374_v60 }
 0x45c   :  { %v1329_v51 = vpop.permute.xlu1 %1328 }
 0x45d   :  { %v1357_v35 = vrot.slane %v1329_v51, %v2687_v0 }
 0x45f   :  { %v1376_v44 = vsel %vm1241_vm6, %v1357_v35, %v1375_v62 }
 0x460   :  { %v1332_v52 = vpop.permute.xlu1 %1331 }
 0x461   :  { %v1361_v59 = vrot.slane %v1332_v52, %v2687_v0 }
 0x463   :  { %v1377_v1 = vsel %vm1243_vm4, %v1361_v59, %v1376_v44 }
 0x464   :  { %v1335_v54 = vpop.permute.xlu1 %1334 }
 0x465   :  { %v1365_v61 = vrot.slane %v1335_v54, %v2687_v0 }
 0x467   :  { %v1378_v4 = vsel %vm1245_vm11, %v1365_v61, %v1377_v1 }
 0x468   :  { %v1338_v49 = vpop.permute.xlu1 %1337 }
 0x469   :  { %v1369_v63 = vrot.slane %v1338_v49, %v2687_v0 }
 0x46b   :  { %v1379_v6 = vsel %vm1247_vm12, %v1369_v63, %v1378_v4 }
 0x46c   :  { %v1341_v2 = vpop.permute.xlu1 %1340 }
 0x46d   :  { %v1373_v5 = vrot.slane %v1341_v2, %v2687_v0 }
 0x46f   :  { %v1380_v7 = vsel %vm1249_vm13, %v1373_v5, %v1379_v6 }
 0x470   :  { %1382 = vst.msk [vmem:[%s2789_s1] sm:$0xff] %vm1252_vm14, %v1380_v7 }

</bundles_post_ra>
